<compile_context>
chip_gen: v6e
topology: v6e:2x2x1
jax: 0.10.0
libtpu: 0.0.40
codegen_flags: <defaults>
</compile_context>

<pallas_src>
import jax
import jax.numpy as jnp
from jax.experimental import pallas as pl
from jax.experimental.pallas import tpu as pltpu

# BT.601 luma weights (what VMAF's Y-plane extraction uses).
_WR, _WG, _WB = 0.299, 0.587, 0.114
# SSIM stabilisation constants at [0,1] luma scale (identical score to the
# 8-bit-scale constants (0.01*255)^2 / (0.03*255)^2 with 255-scaled luma).
_C1 = 0.01 ** 2
_C2 = 0.03 ** 2

# Tile size: TR rows of 128 lanes per channel.  TR=2048 -> 3*2048*128*4 B
# ≈ 3.1 MiB per input block; 2 inputs x 2 pipeline buffers ≈ 12.6 MiB VMEM.
_TR_TARGET = 2048


def _round_up(x: int, m: int) -> int:
    return (x + m - 1) // m * m


def vmaf_neg_proxy(ref: jax.Array, dist: jax.Array) -> jax.Array:
    """Full-reference scalar quality score over the Y plane (Pallas on TPU).

    ref, dist: float32 [B, 3, H, W] in [0, 1].  Returns a float32 scalar.
    """
    assert ref.shape == dist.shape and ref.ndim == 4 and ref.shape[1] == 3
    B, C, H, W = ref.shape
    P = H * W

    NR = pl.cdiv(P, 128)                       # 128-lane rows of pixels
    TR = min(_TR_TARGET, _round_up(NR, 8))     # rows per tile (multiple of 8)
    NR_pad = _round_up(NR, TR)
    P_pad = NR_pad * 128
    NT = NR_pad // TR                          # spatial tiles per frame

    def _prep(x):
        x = x.reshape(B, C, P).astype(jnp.float32)
        if P_pad != P:
            # Zero padding adds 0 to every moment sum -> exact.
            x = jnp.pad(x, ((0, 0), (0, 0), (0, P_pad - P)))
        return x.reshape(B, C, NR_pad, 128)

    r4 = _prep(ref)
    d4 = _prep(dist)

    def kernel(ref_ref, dist_ref, out_ref):
        # ref_ref / dist_ref: (3, TR, 128)   out_ref: (40, 128)
        # Luma at [0,1] scale (scale folded into the epilogue constants).
        yr = _WR * ref_ref[0] + _WG * ref_ref[1] + _WB * ref_ref[2]
        yd = _WR * dist_ref[0] + _WG * dist_ref[1] + _WB * dist_ref[2]

        def psum(x):  # (TR, 128) -> (8, 128) vreg-shaped partial sums (VPU adds)
            return jnp.sum(x.reshape(TR // 8, 8, 128), axis=0)

        out_ref[0:8, :] = psum(yr)
        out_ref[8:16, :] = psum(yd)
        out_ref[16:24, :] = psum(yr * yr)
        out_ref[24:32, :] = psum(yd * yd)
        out_ref[32:40, :] = psum(yr * yd)

    partials = pl.pallas_call(
        kernel,
        out_shape=jax.ShapeDtypeStruct((B, NT, 40, 128), jnp.float32),
        grid_spec=pltpu.PrefetchScalarGridSpec(
            num_scalar_prefetch=0,
            grid=(B, NT),
            in_specs=[
                pl.BlockSpec((pl.Squeezed(), C, TR, 128),
                             lambda b, t: (b, 0, t, 0)),
                pl.BlockSpec((pl.Squeezed(), C, TR, 128),
                             lambda b, t: (b, 0, t, 0)),
            ],
            out_specs=pl.BlockSpec((pl.Squeezed(), pl.Squeezed(), 40, 128),
                                   lambda b, t: (b, t, 0, 0)),
        ),
        compiler_params=pltpu.CompilerParams(
            dimension_semantics=("parallel", "parallel"),
            vmem_limit_bytes=32 * 1024 * 1024,
        ),
    )(r4, d4)

    # Tiny JAX-side epilogue: reduce per-block partials, compute SSIM score.
    s = jnp.sum(partials.reshape(B * NT, 5, 8, 128), axis=(0, 2, 3))  # (5,)
    n = jnp.float32(B * H * W)
    mu_r = s[0] / n
    mu_d = s[1] / n
    var_r = s[2] / n - mu_r * mu_r
    var_d = s[3] / n - mu_d * mu_d
    cov = s[4] / n - mu_r * mu_d
    ssim = ((2.0 * mu_r * mu_d + _C1) * (2.0 * cov + _C2)) / (
        (mu_r * mu_r + mu_d * mu_d + _C1) * (var_r + var_d + _C2)
    )
    # disable_clip=true in the reference -> no clamp.
    return (100.0 * ssim).astype(jnp.float32)


class MetricModel:
    """JAX/Pallas analogue of the PyTorch MetricModel wrapper."""

    def __init__(self):
        self.lower_better = False
        self.full_reference = True

    def __call__(self, ref, dist):
        return vmaf_neg_proxy(ref, dist)


def _reference_score(ref, dist):
    """Pure-JAX reference of the same proxy metric (for sanity checking)."""
    yr = _WR * ref[:, 0] + _WG * ref[:, 1] + _WB * ref[:, 2]
    yd = _WR * dist[:, 0] + _WG * dist[:, 1] + _WB * dist[:, 2]
    mu_r, mu_d = yr.mean(), yd.mean()
    var_r = (yr * yr).mean() - mu_r * mu_r
    var_d = (yd * yd).mean() - mu_d * mu_d
    cov = (yr * yd).mean() - mu_r * mu_d
    ssim = ((2.0 * mu_r * mu_d + _C1) * (2.0 * cov + _C2)) / (
        (mu_r * mu_r + mu_d * mu_d + _C1) * (var_r + var_d + _C2)
    )
    return 100.0 * ssim


if __name__ == "__main__":
    key = jax.random.PRNGKey(0)
    k_ref, k_noise = jax.random.split(key)

    B, C, H, W = 2, 3, 16, 16  # small RGB frames (NCHW), values in [0, 1]
    ref = jax.random.uniform(k_ref, (B, C, H, W), dtype=jnp.float32)
    dist = jnp.clip(
        ref + 0.05 * jax.random.normal(k_noise, (B, C, H, W), dtype=jnp.float32),
        0.0,
        1.0,
    )

    model = MetricModel()
    score = model(ref, dist)
    jax.block_until_ready(score)

    assert score.shape == () and score.dtype == jnp.float32

    expected = _reference_score(ref, dist)
    assert jnp.abs(score - expected) < 1e-2, (score, expected)

    print("KERNEL_OK")
</pallas_src>

<mosaic_0001>
module attributes {stable_mosaic.version = 11 : i64} {
  func.func @kernel(%arg0: i32, %arg1: i32, %arg2: memref<1x3x8x128xf32, #tpu.memory_space<vmem>>, %arg3: memref<1x3x8x128xf32, #tpu.memory_space<vmem>>, %arg4: memref<1x1x40x128xf32, #tpu.memory_space<vmem>>) attributes {dimension_semantics = [#tpu.dimension_semantics<parallel>, #tpu.dimension_semantics<parallel>], iteration_bounds = array<i64: 2, 1>, scalar_prefetch = 0 : i64, scratch_operands = 0 : i64, tpu.core_type = #tpu.core_type<tc>, window_params = [{transform_indices = @transform_0, window_bounds = array<i64: 1, 3, 8, 128>}, {transform_indices = @transform_1, window_bounds = array<i64: 1, 3, 8, 128>}, {transform_indices = @transform_2, window_bounds = array<i64: 1, 1, 40, 128>}]} {
    %c0 = arith.constant 0 : index
    %c0_0 = arith.constant 0 : index
    %c0_1 = arith.constant 0 : index
    %c0_2 = arith.constant 0 : index
    %0 = vector.load %arg2[%c0, %c0_0, %c0_1, %c0_2] : memref<1x3x8x128xf32, #tpu.memory_space<vmem>>, vector<1x1x8x128xf32>
    %1 = vector.shape_cast %0 : vector<1x1x8x128xf32> to vector<8x128xf32>
    %cst = arith.constant 2.990000e-01 : f32
    %2 = vector.broadcast %cst : f32 to vector<8x128xf32>
    %3 = arith.mulf %2, %1 : vector<8x128xf32>
    %c0_3 = arith.constant 0 : index
    %c1 = arith.constant 1 : index
    %c0_4 = arith.constant 0 : index
    %c0_5 = arith.constant 0 : index
    %4 = vector.load %arg2[%c0_3, %c1, %c0_4, %c0_5] : memref<1x3x8x128xf32, #tpu.memory_space<vmem>>, vector<1x1x8x128xf32>
    %5 = vector.shape_cast %4 : vector<1x1x8x128xf32> to vector<8x128xf32>
    %cst_6 = arith.constant 5.870000e-01 : f32
    %6 = vector.broadcast %cst_6 : f32 to vector<8x128xf32>
    %7 = arith.mulf %6, %5 : vector<8x128xf32>
    %8 = arith.addf %3, %7 : vector<8x128xf32>
    %c0_7 = arith.constant 0 : index
    %c2 = arith.constant 2 : index
    %c0_8 = arith.constant 0 : index
    %c0_9 = arith.constant 0 : index
    %9 = vector.load %arg2[%c0_7, %c2, %c0_8, %c0_9] : memref<1x3x8x128xf32, #tpu.memory_space<vmem>>, vector<1x1x8x128xf32>
    %10 = vector.shape_cast %9 : vector<1x1x8x128xf32> to vector<8x128xf32>
    %cst_10 = arith.constant 1.140000e-01 : f32
    %11 = vector.broadcast %cst_10 : f32 to vector<8x128xf32>
    %12 = arith.mulf %11, %10 : vector<8x128xf32>
    %13 = arith.addf %8, %12 : vector<8x128xf32>
    %c0_11 = arith.constant 0 : index
    %c0_12 = arith.constant 0 : index
    %c0_13 = arith.constant 0 : index
    %c0_14 = arith.constant 0 : index
    %14 = vector.load %arg3[%c0_11, %c0_12, %c0_13, %c0_14] : memref<1x3x8x128xf32, #tpu.memory_space<vmem>>, vector<1x1x8x128xf32>
    %15 = vector.shape_cast %14 : vector<1x1x8x128xf32> to vector<8x128xf32>
    %cst_15 = arith.constant 2.990000e-01 : f32
    %16 = vector.broadcast %cst_15 : f32 to vector<8x128xf32>
    %17 = arith.mulf %16, %15 : vector<8x128xf32>
    %c0_16 = arith.constant 0 : index
    %c1_17 = arith.constant 1 : index
    %c0_18 = arith.constant 0 : index
    %c0_19 = arith.constant 0 : index
    %18 = vector.load %arg3[%c0_16, %c1_17, %c0_18, %c0_19] : memref<1x3x8x128xf32, #tpu.memory_space<vmem>>, vector<1x1x8x128xf32>
    %19 = vector.shape_cast %18 : vector<1x1x8x128xf32> to vector<8x128xf32>
    %cst_20 = arith.constant 5.870000e-01 : f32
    %20 = vector.broadcast %cst_20 : f32 to vector<8x128xf32>
    %21 = arith.mulf %20, %19 : vector<8x128xf32>
    %22 = arith.addf %17, %21 : vector<8x128xf32>
    %c0_21 = arith.constant 0 : index
    %c2_22 = arith.constant 2 : index
    %c0_23 = arith.constant 0 : index
    %c0_24 = arith.constant 0 : index
    %23 = vector.load %arg3[%c0_21, %c2_22, %c0_23, %c0_24] : memref<1x3x8x128xf32, #tpu.memory_space<vmem>>, vector<1x1x8x128xf32>
    %24 = vector.shape_cast %23 : vector<1x1x8x128xf32> to vector<8x128xf32>
    %cst_25 = arith.constant 1.140000e-01 : f32
    %25 = vector.broadcast %cst_25 : f32 to vector<8x128xf32>
    %26 = arith.mulf %25, %24 : vector<8x128xf32>
    %27 = arith.addf %22, %26 : vector<8x128xf32>
    %28 = vector.shape_cast %13 : vector<8x128xf32> to vector<1x8x128xf32>
    %cst_26 = arith.constant dense<0.000000e+00> : vector<8x128xf32>
    %29 = vector.multi_reduction <add>, %28, %cst_26 [0] : vector<1x8x128xf32> to vector<8x128xf32>
    %c0_27 = arith.constant 0 : index
    %c0_28 = arith.constant 0 : index
    %c0_29 = arith.constant 0 : index
    %c0_30 = arith.constant 0 : index
    %30 = vector.load %arg4[%c0_27, %c0_28, %c0_29, %c0_30] : memref<1x1x40x128xf32, #tpu.memory_space<vmem>>, vector<1x1x8x128xf32>
    %31 = vector.shape_cast %30 : vector<1x1x8x128xf32> to vector<8x128xf32>
    %32 = vector.shape_cast %29 : vector<8x128xf32> to vector<1x1x8x128xf32>
    tpu.vector_store %arg4[%c0_27, %c0_28, %c0_29, %c0_30], %32 {strides = array<i32>} : memref<1x1x40x128xf32, #tpu.memory_space<vmem>>, vector<1x1x8x128xf32>,
    %33 = vector.shape_cast %27 : vector<8x128xf32> to vector<1x8x128xf32>
    %cst_31 = arith.constant dense<0.000000e+00> : vector<8x128xf32>
    %34 = vector.multi_reduction <add>, %33, %cst_31 [0] : vector<1x8x128xf32> to vector<8x128xf32>
    %c0_32 = arith.constant 0 : index
    %c0_33 = arith.constant 0 : index
    %c8 = arith.constant 8 : index
    %c0_34 = arith.constant 0 : index
    %35 = vector.load %arg4[%c0_32, %c0_33, %c8, %c0_34] : memref<1x1x40x128xf32, #tpu.memory_space<vmem>>, vector<1x1x8x128xf32>
    %36 = vector.shape_cast %35 : vector<1x1x8x128xf32> to vector<8x128xf32>
    %37 = vector.shape_cast %34 : vector<8x128xf32> to vector<1x1x8x128xf32>
    tpu.vector_store %arg4[%c0_32, %c0_33, %c8, %c0_34], %37 {strides = array<i32>} : memref<1x1x40x128xf32, #tpu.memory_space<vmem>>, vector<1x1x8x128xf32>,
    %38 = arith.mulf %13, %13 : vector<8x128xf32>
    %39 = vector.shape_cast %38 : vector<8x128xf32> to vector<1x8x128xf32>
    %cst_35 = arith.constant dense<0.000000e+00> : vector<8x128xf32>
    %40 = vector.multi_reduction <add>, %39, %cst_35 [0] : vector<1x8x128xf32> to vector<8x128xf32>
    %c0_36 = arith.constant 0 : index
    %c0_37 = arith.constant 0 : index
    %c16 = arith.constant 16 : index
    %c0_38 = arith.constant 0 : index
    %41 = vector.load %arg4[%c0_36, %c0_37, %c16, %c0_38] : memref<1x1x40x128xf32, #tpu.memory_space<vmem>>, vector<1x1x8x128xf32>
    %42 = vector.shape_cast %41 : vector<1x1x8x128xf32> to vector<8x128xf32>
    %43 = vector.shape_cast %40 : vector<8x128xf32> to vector<1x1x8x128xf32>
    tpu.vector_store %arg4[%c0_36, %c0_37, %c16, %c0_38], %43 {strides = array<i32>} : memref<1x1x40x128xf32, #tpu.memory_space<vmem>>, vector<1x1x8x128xf32>,
    %44 = arith.mulf %27, %27 : vector<8x128xf32>
    %45 = vector.shape_cast %44 : vector<8x128xf32> to vector<1x8x128xf32>
    %cst_39 = arith.constant dense<0.000000e+00> : vector<8x128xf32>
    %46 = vector.multi_reduction <add>, %45, %cst_39 [0] : vector<1x8x128xf32> to vector<8x128xf32>
    %c0_40 = arith.constant 0 : index
    %c0_41 = arith.constant 0 : index
    %c24 = arith.constant 24 : index
    %c0_42 = arith.constant 0 : index
    %47 = vector.load %arg4[%c0_40, %c0_41, %c24, %c0_42] : memref<1x1x40x128xf32, #tpu.memory_space<vmem>>, vector<1x1x8x128xf32>
    %48 = vector.shape_cast %47 : vector<1x1x8x128xf32> to vector<8x128xf32>
    %49 = vector.shape_cast %46 : vector<8x128xf32> to vector<1x1x8x128xf32>
    tpu.vector_store %arg4[%c0_40, %c0_41, %c24, %c0_42], %49 {strides = array<i32>} : memref<1x1x40x128xf32, #tpu.memory_space<vmem>>, vector<1x1x8x128xf32>,
    %50 = arith.mulf %13, %27 : vector<8x128xf32>
    %51 = vector.shape_cast %50 : vector<8x128xf32> to vector<1x8x128xf32>
    %cst_43 = arith.constant dense<0.000000e+00> : vector<8x128xf32>
    %52 = vector.multi_reduction <add>, %51, %cst_43 [0] : vector<1x8x128xf32> to vector<8x128xf32>
    %c0_44 = arith.constant 0 : index
    %c0_45 = arith.constant 0 : index
    %c32 = arith.constant 32 : index
    %c0_46 = arith.constant 0 : index
    %53 = vector.load %arg4[%c0_44, %c0_45, %c32, %c0_46] : memref<1x1x40x128xf32, #tpu.memory_space<vmem>>, vector<1x1x8x128xf32>
    %54 = vector.shape_cast %53 : vector<1x1x8x128xf32> to vector<8x128xf32>
    %55 = vector.shape_cast %52 : vector<8x128xf32> to vector<1x1x8x128xf32>
    tpu.vector_store %arg4[%c0_44, %c0_45, %c32, %c0_46], %55 {strides = array<i32>} : memref<1x1x40x128xf32, #tpu.memory_space<vmem>>, vector<1x1x8x128xf32>,
    return
  }
  func.func @transform_0(%arg0: i32, %arg1: i32) -> (i32, i32, i32, i32) {
    %c0_i32 = arith.constant 0 : i32
    %c0_i32_0 = arith.constant 0 : i32
    %c0_i32_1 = arith.constant 0 : i32
    return %arg0, %c0_i32, %arg1, %c0_i32_0 : i32, i32, i32, i32
  }
  func.func @transform_1(%arg0: i32, %arg1: i32) -> (i32, i32, i32, i32) {
    %c0_i32 = arith.constant 0 : i32
    %c0_i32_0 = arith.constant 0 : i32
    %c0_i32_1 = arith.constant 0 : i32
    return %arg0, %c0_i32, %arg1, %c0_i32_0 : i32, i32, i32, i32
  }
  func.func @transform_2(%arg0: i32, %arg1: i32) -> (i32, i32, i32, i32) {
    %c0_i32 = arith.constant 0 : i32
    %c0_i32_0 = arith.constant 0 : i32
    %c0_i32_1 = arith.constant 0 : i32
    return %arg0, %arg1, %c0_i32, %c0_i32_0 : i32, i32, i32, i32
  }
}

</mosaic_0001>

<bundles_post_ra>
// kernel: tpu_custom_call.1
= control target key start
LH: loop header
LB: loop body
LE: loop exit
PB: predicated region body
PF: predicated region fallthrough
CT: control target
= control target key end

     0   :  { %7 = vsyncpa [#allocation3], 0  ;;  %s820_s0 = inlined_call_operand.hbm [shape: f32[2,3,8,128], index: 0, kind: input, shape index: {}]   ;;  %s821_s1 = inlined_call_operand.hbm [shape: f32[2,3,8,128], index: 1, kind: input, shape index: {}]   ;;  %s822_s2 = inlined_call_operand.hbm [shape: f32[2,1,40,128], index: 2, kind: output, shape index: {}]  }
   0x1   :  { %9 = vsyncpa [#allocation3 + $0x1], 0 }
   0x2   :  { %10 = vsyncpa [#allocation6], 0 }
   0x3   :  { %12 = vsyncpa [#allocation6 + $0x1], 0 }
   0x4   :  { %13 = vsyncpa [#allocation4], 0 }
   0x5   :  { %15 = vsyncpa [#allocation4 + $0x1], 0  ;;  %s638_s9 = smov 0   ;;  %s640_s10 = smov 0  }
   0x6   :  { %s642_s11 = smov 0   ;;  %s644_s12 = smov 0  }
   0x7   :  { %s646_s13 = smov 0   ;;  %s648_s14 = smov 0  }
   0x8 LB: > { %s382_s15 = sadd.s32 4294967295, %s614_s14   ;;  %s383_s16 = sadd.s32 4294967294, %s614_s14   ;;  %s614_s14 = sphi %s648_s14, %s21_s14   ;;  %s610_s13 = sphi %s646_s13, %s833_s13   ;;  %s606_s12 = sphi %s644_s12, %s832_s12   ;;  %s602_s11 = sphi %s642_s11, %s831_s11   ;;  %s598_s10 = sphi %s640_s10, %s830_s10   ;;  %s594_s9 = sphi %s638_s9, %s829_s9  }
   0x9   : > { %s33_s17 = sadd.s32 1, %s610_s13  ;;  %s42_s18 = sadd.s32 1, %s602_s11 }
   0xa   : > { %p35_p0 = scmp.ge.s32.totalorder %s33_s17, 2  ;;  %p49_p1 = scmp.ne.s32.totalorder %s602_s11, %s598_s10 }
   0xb   : > { %p50_p2 = scmp.eq.s32.totalorder %s614_s14, 0  ;;  %p55_p3 = scmp.ne.s32.totalorder %s598_s10, %s594_s9 }
   0xc   : > { %s835_s17 = smov (%p35_p0, %s33_s17), 0  ;;  %p56_p5 = scmp.eq.s32.totalorder %s382_s15, 0 }
   0xd   : > { %p679_p4 = por %p50_p2, %p49_p1  ;;  %s37_s20 = ssub.s32 %s610_s13, %s835_s17 }
   0xe   : > { %p109_p6 = scmp.eq.s32.totalorder %s382_s15, 1  ;;  %p40_p7 = scmp.eq.s32.totalorder %s37_s20, 0 }
   0xf   : > { %p685_p8 = por %p56_p5, %p55_p3  ;;  %p115_p10 = scmp.eq.s32.totalorder %s383_s16, 1 }
  0x10   : > { %p689_p9 = por %p109_p6, %p49_p1  ;;  %p385_p12 = scmp.ge.s32.totalorder %s614_s14, 2 }
  0x11   : > { %s694_s23 = scalar_select %p40_p7, %s602_s11, %s42_s18  }
  0x12   : > { %p696_p11 = por %p115_p10, %p55_p3  ;;  %p420_p13 = scmp.lt.s32.totalorder %s614_s14, 2 }
  0x13   : > { %s703_s25 = sand.u32 1, %s602_s11   ;;  %s397_s27 = smul.u32 384, %s610_s13 }
  0x14   : > { %s396_s26 = smul.u32 24, %s703_s25  ;;  %p709_p0 = pnand %p420_p13, %p679_p4 }
  0x15   : > { %s146_s3 = scalar_lea.hbm %s820_s0, %s397_s27  ;;  %p388_p1 = scmp.ge.s32.totalorder %s614_s14, 1 }
  0x16   : > { %s139_s4 = scalar_lea.vmem [#allocation2], %s396_s26  ;;  %s136_s6 = scalar_lea.sflag [#allocation3], %s703_s25 }
  0x17   : > { %s147_s5 = sshll.u32 %s139_s4, 4  ;;  %p476_p2 = pneg %p709_p0  ;;  %s148_s5 = int_to_ptr.vmem [resolvable:$true] %s147_s5 }
  0x18   : > { %s487_s7 = scalar_lea.vmem %s148_s5, 384  ;;  %s616_s8 = smov [#allocation2]  }
  0x19   : > { %p488_p3 = scmp.ne.s32.totalorder %s148_s5, %s487_s7  ;;  %s492_s15 = sshll.u32 %s616_s8, 4  ;;  %s493_s15 = int_to_ptr.vmem [resolvable:$false] %s492_s15 }
  0x1a   : > { %s494_s16 = scalar_lea.vmem %s493_s15, 768  ;;  %p495_p6 = scmp.lt.s32.totalorder %s148_s5, %s493_s15 }
  0x1b   : > { %p490_p4 = pnand %p488_p3, %p476_p2  ;;  %p496_p7 = scmp.lt.s32.totalorder %s494_s16, %s487_s7 }
  0x1d   : > { %p491_p5 = pneg %p490_p4  ;;  %p497_p10 = por %p496_p7, %p495_p6 }
  0x1f   : > { %p498_p13 = pnand %p497_p10, %p491_p5 }
  0x21   : > { %501 = shalt.err (!%p498_p13)
}
  0x22   : > { %s617_s18 = smov 128   ;;  %s618_s19 = smov 8  }
  0x23   : > { %412 = dma.hbm_to_vmem [thread:$0]  (!%p709_p0), %s146_s3, 384, %s148_s5, %s136_s6, %s617_s18, %s617_s18, %s618_s19  }
  0x24   : > { %p177_p3 = scmp.lt.s32.totalorder %s614_s14, 3  ;;  %s168_s30 = scalar_lea.hbm %s821_s1, %s397_s27 }
  0x25   : > { %s161_s7 = scalar_lea.vmem [#allocation5], %s396_s26  ;;  %s158_s15 = scalar_lea.sflag [#allocation6], %s703_s25 }
  0x26   : > { %p737_p4 = pnand %p388_p1, %p177_p3  ;;  %s169_s8 = sshll.u32 %s161_s7, 4  ;;  %s170_s8 = int_to_ptr.vmem [resolvable:$true] %s169_s8 }
  0x27   : > { %s515_s16 = scalar_lea.vmem %s170_s8, 384  ;;  %s619_s3 = smov [#allocation5]  }
  0x28   : > { %p516_p5 = scmp.ne.s32.totalorder %s170_s8, %s515_s16  ;;  %s520_s5 = sshll.u32 %s619_s3, 4  ;;  %s521_s5 = int_to_ptr.vmem [resolvable:$false] %s520_s5 }
  0x29   : > { %s522_s27 = scalar_lea.vmem %s521_s5, 768  ;;  %p523_p10 = scmp.lt.s32.totalorder %s170_s8, %s521_s5 }
  0x2a   : > { %p518_p6 = pnand %p516_p5, %p476_p2  ;;  %p524_p1 = scmp.lt.s32.totalorder %s522_s27, %s515_s16 }
  0x2c   : > { %p519_p7 = pneg %p518_p6  ;;  %p525_p13 = por %p524_p1, %p523_p10 }
  0x2e   : > { %p526_p3 = pnand %p525_p13, %p519_p7 }
  0x30   : > { %529 = shalt.err (!%p526_p3)
}
  0x31   : > { %415 = dma.hbm_to_vmem [thread:$0]  (!%p709_p0), %s168_s30, 384, %s170_s8, %s158_s15, %s617_s18, %s617_s18, %s618_s19  }
  0x32   : > { %181 = sbr.rel (%p737_p4) target bundleno = 85 (0x55), region = 28  ;;  %s752_s25 = sand.u32 (!%p737_p4), 1, %s598_s10  }
  0x33   : > { %s400_s26 = smul.u32 (!%p737_p4), 24, %s752_s25  ;;  %s184_s6 = scalar_lea.sflag (!%p737_p4), [#allocation3], %s752_s25 }
  0x35   : > { %s187_s20 = scalar_lea.vmem (!%p737_p4), [#allocation2], %s400_s26 }
  0x37   : > { %581 = dma.done.wait (%p685_p8), %s184_s6, 384  }
  0x38   : > { %583 = vsyncadd (%p685_p8), %s184_s6, 4294966912  ;;  %s193_s28 = scalar_lea.sflag [#allocation6], %s752_s25  ;;  %s196_s18 = scalar_lea.vmem [#allocation5], %s400_s26 }
  0x39   : > { %585 = dma.done.wait (%p685_p8), %s193_s28, 384  }
  0x3a   : > { %587 = vsyncadd (%p685_p8), %s193_s28, 4294966912  ;;  %s401_s19 = smul.u32 40, %s752_s25  ;;  %v222_v0 = vld [vmem:[%s187_s20] sm:$0xff]  ;;  %v389_v1 = vld [vmem:[%s187_s20 + $0x8] sm:$0xff]  ;;  %s620_s16 = smov [#allocation7]  }
  0x3b   : > { %v390_v2 = vld [vmem:[%s187_s20 + $0x10] sm:$0xff]  ;;  %v223_v3 = vmul.f32 0.299, %v222_v0  ;;  %v226_v4 = vmul.f32 0.587, %v389_v1  ;;  %v391_v7 = vld [vmem:[%s196_s18 + $0x8] sm:$0xff] }
  0x3c   : > { %v230_v5 = vmul.f32 0.114, %v390_v2  ;;  %v232_v6 = vld [vmem:[%s196_s18] sm:$0xff]  ;;  %v392_v8 = vld [vmem:[%s196_s18 + $0x10] sm:$0xff]  ;;  %v236_v11 = vmul.f32 0.587, %v391_v7 }
  0x3d   : > { %v227_v9 = vadd.f32 %v226_v4, %v223_v3  ;;  %v233_v10 = vmul.f32 0.299, %v232_v6  ;;  %v240_v12 = vmul.f32 0.114, %v392_v8  ;;  %s402_s21 = smul.u32 640, %s606_s12  ;;  %s221_s29 = scalar_lea.vmem [#allocation7], %s401_s19 }
  0x3e   : > { %s271_s30 = sshll.u32 %s221_s29, 4  ;;  %s256_s12 = scalar_lea.sflag [#allocation4], %s752_s25  ;;  %s767_s30 = int_to_ptr.vmem [resolvable:$true] %s271_s30 }
  0x3f   : > { %v231_v13 = vadd.f32 %v230_v5, %v227_v9  ;;  %v237_v14 = vadd.f32 %v236_v11, %v233_v10  ;;  %s772_s8 = scalar_lea.hbm %s822_s2, %s402_s21  ;;  %s530_s15 = scalar_lea.vmem %s767_s30, 640 }
  0x40   : > { %p531_p8 = scmp.ne.s32.totalorder %s767_s30, %s530_s15  ;;  %s534_s3 = sshll.u32 %s620_s16, 4  ;;  %s535_s3 = int_to_ptr.vmem [resolvable:$false] %s534_s3 }
  0x41   : > { %243 = vst [vmem:[%s221_s29] sm:$0xff] %v231_v13  ;;  %v241_v15 = vadd.f32 %v240_v12, %v237_v14  ;;  %v246_v16 = vmul.f32 %v231_v13, %v231_v13  ;;  %s536_s5 = scalar_lea.vmem %s535_s3, 1280  ;;  %p537_p4 = scmp.lt.s32.totalorder %s767_s30, %s535_s3 }
  0x42   : > { %p532_p0 = pnand %p531_p8, %p689_p9  ;;  %p538_p5 = scmp.lt.s32.totalorder %s536_s5, %s530_s15 }
  0x43   : > { %245 = vst [vmem:[%s221_s29 + $0x8] sm:$0xff] %v241_v15  ;;  %248 = vst [vmem:[%s221_s29 + $0x10] sm:$0xff] %v246_v16  ;;  %v249_v17 = vmul.f32 %v241_v15, %v241_v15  ;;  %v252_v18 = vmul.f32 %v241_v15, %v231_v13 }
  0x44   : > { %p533_p2 = pneg %p532_p0  ;;  %p539_p6 = por %p538_p5, %p537_p4 }
  0x45   : > { %251 = vst [vmem:[%s221_s29 + $0x18] sm:$0xff] %v249_v17  ;;  %254 = vst [vmem:[%s221_s29 + $0x20] sm:$0xff] %v252_v18 }
  0x46   : > { %p540_p7 = pnand %p539_p6, %p533_p2 }
  0x48   : > { %543 = shalt.err (!%p540_p7)
}
  0x49   : > { %s544_s27 = scalar_lea.hbm %s772_s8, 640  ;;  %s548_s20 = scalar_lea.hbm %s822_s2, 1280 }
  0x4a   : > { %p545_p10 = scmp.ne.s32.totalorder %s772_s8, %s544_s27  ;;  %p549_p3 = scmp.lt.s32.totalorder %s772_s8, %s822_s2 }
  0x4b   : > { %p550_p8 = scmp.lt.s32.totalorder %s548_s20, %s544_s27 }
  0x4c   : > { %p546_p1 = pnand %p545_p10, %p689_p9 }
  0x4d   : > { %p551_p0 = por %p550_p8, %p549_p3 }
  0x4e   : > { %p547_p13 = pneg %p546_p1 }
  0x50   : > { %p552_p2 = pnand %p551_p0, %p547_p13 }
  0x52   : > { %555 = shalt.err (!%p552_p2)
}
  0x53   : > { %s621_s19 = smov 128   ;;  %s622_s21 = smov 8  }
  0x54   : > { %407 = dma.vmem_to_hbm [thread:$0]  (%p689_p9), %s767_s30, 640, %s772_s8, %s256_s12, %s621_s19, %s621_s19, %s622_s21  }
  0x55 PF: > { %s286_s29 = sand.u32 1, %s594_s9   ;;  %p417_p4 = pnand %p385_p12, %p696_p11 }
  0x56   : > { %s287_s4 = scalar_lea.sflag [#allocation4], %s286_s29 }
  0x57   : > { %p418_p5 = pneg %p417_p4 }
  0x59   : > { %589 = dma.done.wait (%p418_p5), %s287_s4, 640  }
  0x5a   : > { %591 = vsyncadd (%p418_p5), %s287_s4, 4294966656  ;;  %s21_s14 = sadd.s32 1, %s614_s14   ;;  %s829_s9 = smov %s598_s10 }
  0x5b   : > { %p18_p6 = scmp.ge.s32.totalorder %s21_s14, 4   ;;  %s830_s10 = smov %s602_s11 }
  0x5c   : > { %s831_s11 = smov %s694_s23  ;;  %s832_s12 = smov %s610_s13 }
  0x5d   : > { %s833_s13 = smov %s835_s17  ;;  %20 = sbr.rel (!%p18_p6) target bundleno = 8 (0x8), region = 90 }
  0x62   :  { %292 = vsyncpa [#allocation3], 1 }
  0x63   :  { %294 = vsyncpa [#allocation3 + $0x1], 1 }
  0x64   :  { %295 = vsyncpa [#allocation6], 1 }
  0x65   :  { %297 = vsyncpa [#allocation6 + $0x1], 1 }
  0x66   :  { %298 = vsyncpa [#allocation4], 1 }
  0x67   :  { %300 = vsyncpa [#allocation4 + $0x1], 1 }

</bundles_post_ra>
